<compile_context>
chip_gen: v5e
topology: v5e:2x2
jax: 0.10.0
libtpu: 0.0.40
codegen_flags: <defaults>
</compile_context>

<pallas_src>
import functools
import random

import jax
import jax.numpy as jnp
from jax.experimental import pallas as pl
from jax.experimental.pallas import tpu as pltpu


# ----------------------------------------------------------------------------- helpers

def _device_kind():
    try:
        return jax.devices()[0].device_kind.lower()
    except Exception:
        return ""


def _is_v7x():
    return "v7" in _device_kind()


def _auto_compute_dtype():
    # bf16 matmul operands on v6e/v7x (native MXU path, half the x HBM read);
    # f32 on v5e / unknown chips.
    k = _device_kind()
    if "v6" in k or "v7" in k:
        return jnp.bfloat16
    return jnp.float32


def _default_tile(batch, prefer_two_steps):
    """Biggest batch tile <= 2048 (multiple of 8) that divides the batch.

    Per-grid-step overhead (~0.35 us) is the dominant cost for this tiny MLP, so we
    want few, large steps.  On v7x the cap is floor(B/2) (rounded down to 8) so the
    'parallel' batch axis keeps >= 2 grid steps and both TensorCores get work.
    """
    if batch <= 8:
        return batch
    cap = 2048
    if prefer_two_steps and batch >= 16:
        cap = min(cap, max(8, (batch // 2) // 8 * 8))
    tb = min(cap, batch)
    tb -= tb % 8
    while tb >= 8:
        if batch % tb == 0:
            return tb
        tb -= 8
    return batch  # odd / tiny batch: one block equal to the full batch dim


# ------------------------------------------------------------------------------ kernel

def _mlp_kernel(n_actions, compute_dtype, emit_q, emit_actions,
                x_ref, w1_ref, b1_ref, w2_ref, b2_ref, w3_ref, b3_ref,
                *out_refs):
    # Activation cast happens in-vreg (no extra HBM pass when compute_dtype=bf16).
    x = x_ref[...].astype(compute_dtype)
    # Layer 1: (tb, obs_dim) @ (obs_dim, 64) + b1 -> ReLU   (f32 accumulate)
    h1 = jnp.dot(x, w1_ref[...], preferred_element_type=jnp.float32)
    h1 = jnp.maximum(h1 + b1_ref[...], 0.0)
    # Layer 2: (tb, 64) @ (64, 128) + b2 -> ReLU
    h2 = jnp.dot(h1.astype(compute_dtype), w2_ref[...],
                 preferred_element_type=jnp.float32)
    h2 = jnp.maximum(h2 + b2_ref[...], 0.0)
    # Layer 3: (tb, 128) @ (128, n_actions) + b3  (unpadded — block == full last dim)
    q = jnp.dot(h2.astype(compute_dtype), w3_ref[...],
                preferred_element_type=jnp.float32)
    q = q + b3_ref[...]

    idx = 0
    if emit_q:
        out_refs[idx][...] = q.astype(out_refs[idx].dtype)
        idx += 1
    if emit_actions:
        # Fused greedy action: first maximal index (== jnp.argmax / torch.argmax).
        col = jax.lax.broadcasted_iota(jnp.int32, q.shape, dimension=1)
        q_max = jnp.max(q, axis=-1, keepdims=True)
        first_hit = jnp.where(q == q_max, col, jnp.int32(n_actions))
        out_refs[idx][...] = jnp.min(first_hit, axis=-1,
                                     keepdims=True).astype(out_refs[idx].dtype)


# ----------------------------------------------------------------------------- wrapper

@functools.partial(jax.jit,
                   static_argnames=("tile_b", "compute_dtype",
                                    "return_q", "return_actions"))
def policy_forward(x, params, *, tile_b=None, compute_dtype=None,
                   return_q=True, return_actions=False):
    """Fused Pallas forward pass of the Policy MLP (+ optional greedy action head).

    x:      (B, obs_dim) or (obs_dim,) float32 observations.
    params: dict with w1 (obs_dim,64), b1 (1,64), w2 (64,128), b2 (1,128),
            w3 (128,n_actions), b3 (1,n_actions).
    Returns q (B, n_actions) f32 and/or (B,) int32 greedy actions, per flags.
    """
    if not (return_q or return_actions):
        raise ValueError("at least one of return_q / return_actions must be True")
    if compute_dtype is None:
        compute_dtype = _auto_compute_dtype()

    squeeze = x.ndim == 1
    if squeeze:
        x = x[None, :]
    B, obs_dim = x.shape
    n_actions = params["w3"].shape[1]

    tb = _default_tile(B, _is_v7x()) if tile_b is None else tile_b
    assert B % tb == 0, f"batch {B} must be divisible by tile {tb}"
    assert tb == B or tb % 8 == 0, f"tile {tb} must be a multiple of 8 (f32 sublane)"

    # Matmul operands in compute dtype, bias/ReLU math in f32.  These are no-ops if
    # params were pre-cast with prepare_params(); under jit they fuse either way.
    w1 = params["w1"].astype(compute_dtype)
    w2 = params["w2"].astype(compute_dtype)
    w3 = params["w3"].astype(compute_dtype)
    b1 = params["b1"].astype(jnp.float32)
    b2 = params["b2"].astype(jnp.float32)
    b3 = params["b3"].astype(jnp.float32)

    # Weights/biases are tiny — present the full array to every grid step.
    full = lambda a: pl.BlockSpec(a.shape, lambda i: (0, 0))

    out_shape, out_specs = [], []
    if return_q:
        out_shape.append(jax.ShapeDtypeStruct((B, n_actions), jnp.float32))
        out_specs.append(pl.BlockSpec((tb, n_actions), lambda i: (i, 0)))
    if return_actions:
        out_shape.append(jax.ShapeDtypeStruct((B, 1), jnp.int32))
        out_specs.append(pl.BlockSpec((tb, 1), lambda i: (i, 0)))

    csize = jnp.dtype(compute_dtype).itemsize
    flops = 2 * B * (obs_dim * 64 + 64 * 128 + 128 * n_actions)
    bytes_accessed = (B * obs_dim * x.dtype.itemsize
                      + (obs_dim * 64 + 64 * 128 + 128 * n_actions) * csize
                      + (64 + 128 + n_actions) * 4
                      + (B * n_actions * 4 if return_q else 0)
                      + (B * 4 if return_actions else 0))

    outs = pl.pallas_call(
        functools.partial(_mlp_kernel, n_actions, compute_dtype,
                          return_q, return_actions),
        out_shape=tuple(out_shape),
        grid_spec=pltpu.PrefetchScalarGridSpec(
            num_scalar_prefetch=0,
            grid=(B // tb,),
            in_specs=[
                pl.BlockSpec((tb, obs_dim), lambda i: (i, 0)),   # x, tiled over batch
                full(w1), full(b1), full(w2), full(b2), full(w3), full(b3),
            ],
            out_specs=out_specs,
        ),
        compiler_params=pltpu.CompilerParams(
            dimension_semantics=("parallel",),   # v7x: shards batch tiles over 2 TCs
        ),
        cost_estimate=pl.CostEstimate(
            flops=flops, transcendentals=0, bytes_accessed=bytes_accessed),
    )(x, w1, b1, w2, b2, w3, b3)

    results, idx = [], 0
    if return_q:
        q = outs[idx]; idx += 1
        results.append(q[0] if squeeze else q)
    if return_actions:
        a = outs[idx][:, 0]
        results.append(a[0] if squeeze else a)
    return results[0] if len(results) == 1 else tuple(results)


def prepare_params(params, compute_dtype=None):
    """One-time prep (at init / target-network sync): weights pre-cast to the matmul
    compute dtype, biases to f32, so the jitted forward does zero per-call prep."""
    if compute_dtype is None:
        compute_dtype = _auto_compute_dtype()
    return dict(
        w1=jnp.asarray(params["w1"], compute_dtype),
        b1=jnp.asarray(params["b1"], jnp.float32),
        w2=jnp.asarray(params["w2"], compute_dtype),
        b2=jnp.asarray(params["b2"], jnp.float32),
        w3=jnp.asarray(params["w3"], compute_dtype),
        b3=jnp.asarray(params["b3"], jnp.float32),
    )


def get_action(obs, params, epsilon=0.0, compute_dtype=None):
    """Epsilon-greedy action; the greedy branch uses the kernel's fused argmax and
    skips the Q writeback entirely (action-only output)."""
    n_actions = params["w3"].shape[1]
    if epsilon > 0 and random.random() <= epsilon:
        return random.randrange(n_actions)
    act = policy_forward(obs, params, compute_dtype=compute_dtype,
                         return_q=False, return_actions=True)
    return int(act)


def init_params(key, obs_dim, n_actions):
    """Deterministic synthetic parameters matching nn.Linear init, stored (in,out)."""
    k1, k2, k3, k4, k5, k6 = jax.random.split(key, 6)

    def lin(kw, kb, fan_in, fan_out):
        bound = 1.0 / jnp.sqrt(fan_in)
        w = jax.random.uniform(kw, (fan_in, fan_out), jnp.float32, -bound, bound)
        b = jax.random.uniform(kb, (1, fan_out), jnp.float32, -bound, bound)
        return w, b

    w1, b1 = lin(k1, k2, obs_dim, 64)
    w2, b2 = lin(k3, k4, 64, 128)
    w3, b3 = lin(k5, k6, 128, n_actions)
    return dict(w1=w1, b1=b1, w2=w2, b2=b2, w3=w3, b3=b3)


def policy_forward_ref(x, p):
    h1 = jnp.maximum(x @ p["w1"] + p["b1"], 0.0)
    h2 = jnp.maximum(h1 @ p["w2"] + p["b2"], 0.0)
    return h2 @ p["w3"] + p["b3"]


if __name__ == "__main__":
    obs_dim, n_actions, batch = 16, 4, 8

    key = jax.random.PRNGKey(0)
    kx, kp, kbig = jax.random.split(key, 3)
    x = jax.random.normal(kx, (batch, obs_dim), jnp.float32)
    params = init_params(kp, obs_dim, n_actions)
    q_ref = policy_forward_ref(x, params)

    # 1) f32 path: Q + fused greedy actions, tight check vs pure-JAX reference.
    q, acts = policy_forward(x, params, compute_dtype=jnp.float32,
                             return_actions=True)
    q, acts = jax.block_until_ready((q, acts))
    assert q.shape == (batch, n_actions)
    assert jnp.allclose(q, q_ref, atol=1e-5, rtol=1e-5), "Q mismatch vs reference"
    assert jnp.array_equal(acts, jnp.argmax(q_ref, axis=-1).astype(jnp.int32)), \
        "fused argmax mismatch"

    # 2) Action-only path (no Q writeback at all).
    acts_only = jax.block_until_ready(
        policy_forward(x, params, compute_dtype=jnp.float32,
                       return_q=False, return_actions=True))
    assert jnp.array_equal(acts_only, acts)

    # 3) Single-observation get_action (greedy, fused in-kernel argmax).
    a0 = get_action(x[0], params, compute_dtype=jnp.float32)
    assert a0 == int(jnp.argmax(q_ref[0]))
    a0_auto = get_action(x[0], params)          # auto dtype (bf16 on v6e/v7x)
    assert 0 <= a0_auto < n_actions

    # 4) Larger batch exercises the multi-step / dual-TC tile selection.
    xb = jax.random.normal(kbig, (512, obs_dim), jnp.float32)
    qb = jax.block_until_ready(
        policy_forward(xb, params, compute_dtype=jnp.float32))
    assert jnp.allclose(qb, policy_forward_ref(xb, params), atol=1e-4, rtol=1e-4)

    # 5) bf16 compute path with pre-cast params (f32 accumulate); loose check.
    #    Note: bf16-rounded Q can flip argmax on near-ties, so only Q is checked here.
    p16 = prepare_params(params, jnp.bfloat16)
    q16 = jax.block_until_ready(policy_forward(x, p16, compute_dtype=jnp.bfloat16))
    assert jnp.allclose(q16, q_ref, atol=1e-1, rtol=1e-1)

    # 6) Auto-selected dtype path (whatever the local chip prefers).
    q_auto = jax.block_until_ready(policy_forward(x, params))
    assert jnp.allclose(q_auto, q_ref, atol=1e-1, rtol=1e-1)

    print("KERNEL_OK")
</pallas_src>

<mosaic_0001>
module attributes {stable_mosaic.version = 11 : i64} {
  func.func @_mlp_kernel(%arg0: i32, %arg1: memref<8x16xf32, #tpu.memory_space<vmem>>, %arg2: memref<16x64xf32, #tpu.memory_space<vmem>>, %arg3: memref<1x64xf32, #tpu.memory_space<vmem>>, %arg4: memref<64x128xf32, #tpu.memory_space<vmem>>, %arg5: memref<1x128xf32, #tpu.memory_space<vmem>>, %arg6: memref<128x4xf32, #tpu.memory_space<vmem>>, %arg7: memref<1x4xf32, #tpu.memory_space<vmem>>, %arg8: memref<8x4xf32, #tpu.memory_space<vmem>>, %arg9: memref<8x1xi32, #tpu.memory_space<vmem>>) attributes {dimension_semantics = [#tpu.dimension_semantics<parallel>], iteration_bounds = array<i64: 1>, scalar_prefetch = 0 : i64, scratch_operands = 0 : i64, tpu.core_type = #tpu.core_type<tc>, window_params = [{transform_indices = @transform_0, window_bounds = array<i64: 8, 16>}, {pipeline_mode = #tpu.pipeline_mode<synchronous>, transform_indices = @transform_1, window_bounds = array<i64: 16, 64>}, {pipeline_mode = #tpu.pipeline_mode<synchronous>, transform_indices = @transform_2, window_bounds = array<i64: 1, 64>}, {pipeline_mode = #tpu.pipeline_mode<synchronous>, transform_indices = @transform_3, window_bounds = array<i64: 64, 128>}, {pipeline_mode = #tpu.pipeline_mode<synchronous>, transform_indices = @transform_4, window_bounds = array<i64: 1, 128>}, {pipeline_mode = #tpu.pipeline_mode<synchronous>, transform_indices = @transform_5, window_bounds = array<i64: 128, 4>}, {pipeline_mode = #tpu.pipeline_mode<synchronous>, transform_indices = @transform_6, window_bounds = array<i64: 1, 4>}, {transform_indices = @transform_7, window_bounds = array<i64: 8, 4>}, {transform_indices = @transform_8, window_bounds = array<i64: 8, 1>}]} {
    %c0 = arith.constant 0 : index
    %c0_0 = arith.constant 0 : index
    %0 = vector.load %arg1[%c0, %c0_0] : memref<8x16xf32, #tpu.memory_space<vmem>>, vector<8x16xf32>
    %c0_1 = arith.constant 0 : index
    %c0_2 = arith.constant 0 : index
    %1 = vector.load %arg2[%c0_1, %c0_2] : memref<16x64xf32, #tpu.memory_space<vmem>>, vector<16x64xf32>
    %cst = arith.constant dense<0.000000e+00> : vector<8x64xf32>
    %2 = tpu.matmul %0, %1, %cst {dimension_numbers = #tpu.dot_dimension_numbers<[1], [0], [0], [1], [0, 0, 1, 1], [], []>} : vector<8x16xf32>, vector<16x64xf32>, vector<8x64xf32> -> vector<8x64xf32>
    %c0_3 = arith.constant 0 : index
    %c0_4 = arith.constant 0 : index
    %3 = vector.load %arg3[%c0_3, %c0_4] : memref<1x64xf32, #tpu.memory_space<vmem>>, vector<1x64xf32>
    %4 = vector.broadcast %3 : vector<1x64xf32> to vector<8x64xf32>
    %5 = arith.addf %2, %4 : vector<8x64xf32>
    %cst_5 = arith.constant 0.000000e+00 : f32
    %6 = vector.broadcast %cst_5 : f32 to vector<8x64xf32>
    %7 = arith.maximumf %5, %6 : vector<8x64xf32>
    %c0_6 = arith.constant 0 : index
    %c0_7 = arith.constant 0 : index
    %8 = vector.load %arg4[%c0_6, %c0_7] : memref<64x128xf32, #tpu.memory_space<vmem>>, vector<64x128xf32>
    %cst_8 = arith.constant dense<0.000000e+00> : vector<8x128xf32>
    %9 = tpu.matmul %7, %8, %cst_8 {dimension_numbers = #tpu.dot_dimension_numbers<[1], [0], [0], [1], [0, 0, 1, 1], [], []>} : vector<8x64xf32>, vector<64x128xf32>, vector<8x128xf32> -> vector<8x128xf32>
    %c0_9 = arith.constant 0 : index
    %c0_10 = arith.constant 0 : index
    %10 = vector.load %arg5[%c0_9, %c0_10] : memref<1x128xf32, #tpu.memory_space<vmem>>, vector<1x128xf32>
    %11 = vector.broadcast %10 : vector<1x128xf32> to vector<8x128xf32>
    %12 = arith.addf %9, %11 : vector<8x128xf32>
    %cst_11 = arith.constant 0.000000e+00 : f32
    %13 = vector.broadcast %cst_11 : f32 to vector<8x128xf32>
    %14 = arith.maximumf %12, %13 : vector<8x128xf32>
    %c0_12 = arith.constant 0 : index
    %c0_13 = arith.constant 0 : index
    %15 = vector.load %arg6[%c0_12, %c0_13] : memref<128x4xf32, #tpu.memory_space<vmem>>, vector<128x4xf32>
    %cst_14 = arith.constant dense<0.000000e+00> : vector<8x4xf32>
    %16 = tpu.matmul %14, %15, %cst_14 {dimension_numbers = #tpu.dot_dimension_numbers<[1], [0], [0], [1], [0, 0, 1, 1], [], []>} : vector<8x128xf32>, vector<128x4xf32>, vector<8x4xf32> -> vector<8x4xf32>
    %c0_15 = arith.constant 0 : index
    %c0_16 = arith.constant 0 : index
    %17 = vector.load %arg7[%c0_15, %c0_16] : memref<1x4xf32, #tpu.memory_space<vmem>>, vector<1x4xf32>
    %18 = vector.broadcast %17 : vector<1x4xf32> to vector<8x4xf32>
    %19 = arith.addf %16, %18 : vector<8x4xf32>
    %c0_17 = arith.constant 0 : index
    %c0_18 = arith.constant 0 : index
    %20 = vector.load %arg8[%c0_17, %c0_18] : memref<8x4xf32, #tpu.memory_space<vmem>>, vector<8x4xf32>
    tpu.vector_store %arg8[%c0_17, %c0_18], %19 {strides = array<i32>} : memref<8x4xf32, #tpu.memory_space<vmem>>, vector<8x4xf32>,
    %21 = tpu.iota {dimensions = array<i32: 1>} : vector<8x4xi32>
    %cst_19 = arith.constant dense<0xFF800000> : vector<8xf32>
    %22 = vector.multi_reduction <maximumf>, %19, %cst_19 [1] : vector<8x4xf32> to vector<8xf32>
    %23 = vector.shape_cast %22 : vector<8xf32> to vector<8x1xf32>
    %24 = vector.broadcast %23 : vector<8x1xf32> to vector<8x4xf32>
    %25 = arith.cmpf oeq, %19, %24 : vector<8x4xf32>
    %c4_i32 = arith.constant 4 : i32
    %26 = vector.broadcast %c4_i32 : i32 to vector<8x4xi32>
    %27 = arith.select %25, %21, %26 : vector<8x4xi1>, vector<8x4xi32>
    %cst_20 = arith.constant dense<2147483647> : vector<8xi32>
    %28 = vector.multi_reduction <minsi>, %27, %cst_20 [1] : vector<8x4xi32> to vector<8xi32>
    %29 = vector.shape_cast %28 : vector<8xi32> to vector<8x1xi32>
    %c0_21 = arith.constant 0 : index
    %c0_22 = arith.constant 0 : index
    %30 = vector.load %arg9[%c0_21, %c0_22] : memref<8x1xi32, #tpu.memory_space<vmem>>, vector<8x1xi32>
    tpu.vector_store %arg9[%c0_21, %c0_22], %29 {strides = array<i32>} : memref<8x1xi32, #tpu.memory_space<vmem>>, vector<8x1xi32>,
    return
  }
  func.func @transform_0(%arg0: i32) -> (i32, i32) {
    %c0_i32 = arith.constant 0 : i32
    %c0_i32_0 = arith.constant 0 : i32
    return %arg0, %c0_i32 : i32, i32
  }
  func.func @transform_1(%arg0: i32) -> (i32, i32) {
    %c0_i32 = arith.constant 0 : i32
    %c0_i32_0 = arith.constant 0 : i32
    %c0_i32_1 = arith.constant 0 : i32
    return %c0_i32, %c0_i32_0 : i32, i32
  }
  func.func @transform_2(%arg0: i32) -> (i32, i32) {
    %c0_i32 = arith.constant 0 : i32
    %c0_i32_0 = arith.constant 0 : i32
    %c0_i32_1 = arith.constant 0 : i32
    return %c0_i32, %c0_i32_0 : i32, i32
  }
  func.func @transform_3(%arg0: i32) -> (i32, i32) {
    %c0_i32 = arith.constant 0 : i32
    %c0_i32_0 = arith.constant 0 : i32
    %c0_i32_1 = arith.constant 0 : i32
    return %c0_i32, %c0_i32_0 : i32, i32
  }
  func.func @transform_4(%arg0: i32) -> (i32, i32) {
    %c0_i32 = arith.constant 0 : i32
    %c0_i32_0 = arith.constant 0 : i32
    %c0_i32_1 = arith.constant 0 : i32
    return %c0_i32, %c0_i32_0 : i32, i32
  }
  func.func @transform_5(%arg0: i32) -> (i32, i32) {
    %c0_i32 = arith.constant 0 : i32
    %c0_i32_0 = arith.constant 0 : i32
    %c0_i32_1 = arith.constant 0 : i32
    return %c0_i32, %c0_i32_0 : i32, i32
  }
  func.func @transform_6(%arg0: i32) -> (i32, i32) {
    %c0_i32 = arith.constant 0 : i32
    %c0_i32_0 = arith.constant 0 : i32
    %c0_i32_1 = arith.constant 0 : i32
    return %c0_i32, %c0_i32_0 : i32, i32
  }
  func.func @transform_7(%arg0: i32) -> (i32, i32) {
    %c0_i32 = arith.constant 0 : i32
    %c0_i32_0 = arith.constant 0 : i32
    return %arg0, %c0_i32 : i32, i32
  }
  func.func @transform_8(%arg0: i32) -> (i32, i32) {
    %c0_i32 = arith.constant 0 : i32
    %c0_i32_0 = arith.constant 0 : i32
    return %arg0, %c0_i32 : i32, i32
  }
}

</mosaic_0001>

<bundles_post_ra>
// kernel: policy_forward.1
= control target key start
LH: loop header
LB: loop body
LE: loop exit
PB: predicated region body
PF: predicated region fallthrough
CT: control target
= control target key end

     0   :  { %vm35_vm0 = vcmask 130048   ;;  %vm72_vm1 = vcmask 523264   ;;  %vm137_vm2 = vcmask 31744   ;;  %v139_v39 = vlaneseq  ;;  %s317_s1 = inlined_call_operand.vmem [shape: f32[16,64], index: 1, kind: input, shape index: {}]   ;;  %s318_s0 = inlined_call_operand.vmem [shape: f32[8,16], index: 0, kind: input, shape index: {}]   ;;  %s319_s3 = inlined_call_operand.vmem [shape: f32[64,128], index: 3, kind: input, shape index: {}]   ;;  %s320_s2 = inlined_call_operand.vmem [shape: f32[1,64], index: 2, kind: input, shape index: {}]   ;;  %s321_s4 = inlined_call_operand.vmem [shape: f32[1,128], index: 4, kind: input, shape index: {}]   ;;  %s322_s5 = inlined_call_operand.vmem [shape: f32[128,4], index: 5, kind: input, shape index: {}]   ;;  %s323_s6 = inlined_call_operand.vmem [shape: f32[1,4], index: 6, kind: input, shape index: {}]   ;;  %s324_s7 = inlined_call_operand.vmem [shape: f32[8,4], index: 7, kind: output, shape index: {0}]   ;;  %s325_s8 = inlined_call_operand.vmem [shape: s32[8,1], index: 8, kind: output, shape index: {1}]  }
   0x1   :  { %v30_v0 = vld [vmem:[%s317_s1 + $0x8] sm:$0xff]  ;;  %v29_v1 = vld [vmem:[%s317_s1] sm:$0xff]  ;;  %v67_v3 = vld [vmem:[%s319_s3 + $0x38] sm:$0xff]  ;;  %vm161_vm5 = vcmask 7168  }
   0x2   :  { %53 = vmatpush.msra.mxu0 %v30_v0  ;;  %v28_v2 = vld [vmem:[%s318_s0] sm:$0xff]  ;;  %v66_v4 = vld [vmem:[%s319_s3 + $0x30] sm:$0xff]  ;;  %84 = vmatpush.msra.mxu1 %v67_v3  ;;  %v65_v5 = vld [vmem:[%s319_s3 + $0x28] sm:$0xff]  ;;  %v140_v40 = vand.u32 127, %v139_v39 }
   0x3   :  { %v64_v6 = vld [vmem:[%s319_s3 + $0x20] sm:$0xff]  ;;  %v63_v7 = vld [vmem:[%s319_s3 + $0x18] sm:$0xff]  ;;  %v62_v8 = vld [vmem:[%s319_s3 + $0x10] sm:$0xff] }
   0x4   :  { %54 = vmatpush.msra.mxu0 %v29_v1  ;;  %85 = vmatpush.msra.mxu1 %v66_v4  ;;  %v61_v9 = vld [vmem:[%s319_s3 + $0x8] sm:$0xff]  ;;  %v60_v10 = vld [vmem:[%s319_s3] sm:$0xff]  ;;  %v112_v11 = vld [vmem:[%s322_s5 + $0x78] sm:$0xff] }
   0x5   :  { %171 = vmatmul.msk.f32.vlgmr.msra.gmra.mxu0 %vm35_vm0, %v28_v2  ;;  %v111_v12 = vld [vmem:[%s322_s5 + $0x70] sm:$0xff]  ;;  %117 = vmatpush.msra.mxu2 %v112_v11  ;;  %v110_v13 = vld [vmem:[%s322_s5 + $0x68] sm:$0xff]  ;;  %v109_v14 = vld [vmem:[%s322_s5 + $0x60] sm:$0xff] }
   0x6   :  { %86 = vmatpush.msra.mxu1 %v65_v5  ;;  %v108_v15 = vld [vmem:[%s322_s5 + $0x58] sm:$0xff]  ;;  %v107_v16 = vld [vmem:[%s322_s5 + $0x50] sm:$0xff]  ;;  %v106_v17 = vld [vmem:[%s322_s5 + $0x48] sm:$0xff] }
   0x7   :  { %118 = vmatpush.msra.mxu2 %v111_v12  ;;  %v105_v18 = vld [vmem:[%s322_s5 + $0x40] sm:$0xff]  ;;  %v104_v19 = vld [vmem:[%s322_s5 + $0x38] sm:$0xff]  ;;  %v103_v20 = vld [vmem:[%s322_s5 + $0x30] sm:$0xff] }
   0x8   :  { %87 = vmatpush.msra.mxu1 %v64_v6  ;;  %v102_v21 = vld [vmem:[%s322_s5 + $0x28] sm:$0xff]  ;;  %v101_v22 = vld [vmem:[%s322_s5 + $0x20] sm:$0xff]  ;;  %v100_v23 = vld [vmem:[%s322_s5 + $0x18] sm:$0xff] }
   0x9   :  { %119 = vmatpush.msra.mxu2 %v110_v13  ;;  %v173_v24 = vld [vmem:[%s320_s2] ss:$0 sm:$0xff]  ;;  %v99_v28 = vld [vmem:[%s322_s5 + $0x10] sm:$0xff]  ;;  %v98_v29 = vld [vmem:[%s322_s5 + $0x8] sm:$0xff] }
   0xa   :  { %88 = vmatpush.msra.mxu1 %v63_v7  ;;  %v97_v30 = vld [vmem:[%s322_s5] sm:$0xff] }
   0xb   :  { %120 = vmatpush.msra.mxu2 %v109_v14  ;;  %v174_v31 = vld [vmem:[%s321_s4] ss:$0 sm:$0xff] }
   0xc   :  { %89 = vmatpush.msra.mxu1 %v62_v8  ;;  %v175_v35 = vld [vmem:[%s323_s6] ss:$0 sm:$0xff] }
   0xd   :  { %121 = vmatpush.msra.mxu2 %v108_v15 }
   0xe   :  { %90 = vmatpush.msra.mxu1 %v61_v9 }
   0xf   :  { %122 = vmatpush.msra.mxu2 %v107_v16 }
  0x10   :  { %91 = vmatpush.msra.mxu1 %v60_v10 }
  0x11   :  { %123 = vmatpush.msra.mxu2 %v106_v17 }
  0x13   :  { %124 = vmatpush.msra.mxu2 %v105_v18 }
  0x15   :  { %125 = vmatpush.msra.mxu2 %v104_v19 }
  0x17   :  { %126 = vmatpush.msra.mxu2 %v103_v20 }
  0x19   :  { %127 = vmatpush.msra.mxu2 %v102_v21 }
  0x1b   :  { %128 = vmatpush.msra.mxu2 %v101_v22 }
  0x1d   :  { %129 = vmatpush.msra.mxu2 %v100_v23 }
  0x1f   :  { %130 = vmatpush.msra.mxu2 %v99_v28 }
  0x21   :  { %131 = vmatpush.msra.mxu2 %v98_v29 }
  0x23   :  { %132 = vmatpush.msra.mxu2 %v97_v30 }
  0x82   :  { %v56_v25 = vpop.f32.mrf.mxu0 }
  0x83   :  { %v57_v26 = vadd.f32 %v173_v24, %v56_v25 }
  0x85   :  { %v59_v27 = vmax.f32 %v57_v26, 0.0 }
  0x87   :  { %172 = vmatmul.msk.f32.vlgmr.msra.gmra.mxu1 %vm72_vm1, %v59_v27 }
 0x104   :  { %v93_v32 = vpop.f32.mrf.mxu1 }
 0x105   :  { %v94_v33 = vadd.f32 %v174_v31, %v93_v32 }
 0x107   :  { %v96_v34 = vmax.f32 %v94_v33, 0.0 }
 0x109   :  { %133 = vmatmul.f32.vlgmr.msra.gmra.mxu2 %v96_v34 }
 0x18c   :  { %v134_v36 = vpop.f32.mrf.mxu2 }
 0x18d   :  { %v135_v37 = vadd.f32 %v175_v35, %v134_v36 }
 0x18f   :  { %v141_v38 = vsel %vm137_vm2, %v135_v37, -inf  ;;  %138 = vst.msk [vmem:[%s324_s7] sm:$0xff] %vm137_vm2, %v135_v37 }
 0x190   :  { %142 = vmax.xlane.f32.xlu0 %v141_v38 }
 0x203   :  { %v143_v41 = vpop.xlane.xlu0 %142 }
 0x204   :  { %vm144_vm3 = vcmp.eq.f32.partialorder %v135_v37, %v143_v41 }
 0x205   :  { %v145_v42 = vsel %vm144_vm3, %v140_v40, 4 }
 0x206   :  { %v146_v43 = vsel %vm137_vm2, %v145_v42, 2147483647 }
 0x207   :  { %v148_v44 = vshra.s32 %v146_v43, 16  ;;  %v147_v46 = vand.u32 65535, %v146_v43 }
 0x209   :  { %v150_v45 = vcvt.s32.f32 %v148_v44  ;;  %v149_v48 = vcvt.s32.f32 %v147_v46 }
 0x20b   :  { %151 = vmin.xlane.f32.xlu0 %v150_v45 }
 0x27e   :  { %v152_v47 = vpop.xlane.xlu0 %151 }
 0x27f   :  { %vm153_vm4 = vcmp.eq.f32.partialorder %v150_v45, %v152_v47  ;;  %v158_v50 = vcvt.f32.s32 %v152_v47 }
 0x280   :  { %v154_v49 = vsel %vm153_vm4, %v149_v48, inf }
 0x281   :  { %155 = vmin.xlane.f32.xlu1 %v154_v49  ;;  %v159_v52 = vshll.u32 %v158_v50, 16 }
 0x2f4   :  { %v156_v51 = vpop.xlane.xlu1 %155 }
 0x2f5   :  { %v157_v53 = vcvt.f32.s32 %v156_v51 }
 0x2f7   :  { %v160_v54 = vadd.s32 %v159_v52, %v157_v53 }
 0x2f9   :  { %162 = vst.msk [vmem:[%s325_s8] sm:$0xff] %vm161_vm5, %v160_v54 }

</bundles_post_ra>
